<compile_context>
chip_gen: v5e
topology: v5e:2x2
jax: 0.10.0
libtpu: 0.0.40
codegen_flags: <defaults>
</compile_context>

<pallas_src>
import functools
import math

import numpy as np
import jax
import jax.numpy as jnp
from jax.experimental import pallas as pl
from jax.experimental.pallas import tpu as pltpu


def _round_up(x, m):
    return (x + m - 1) // m * m


_TK_CANDIDATES = (512, 384, 256, 128)
_TN_CANDIDATES = (512, 256, 128)


@functools.lru_cache(maxsize=None)
def _vmem_limit_bytes():
    """Generation-aware scoped-VMEM request (leave headroom on v7x's 64 MiB)."""
    cap = 128 * 1024 * 1024
    try:
        info = pltpu.get_tpu_info()
        cap = int(getattr(info, "vmem_capacity_bytes", cap))
    except Exception:
        pass
    return min((cap * 3) // 4, 100 * 1024 * 1024)


def _choose_tm(M, cap=1024):
    """Largest M tile <= cap that does not pad M by more than ~12%."""
    Mp0 = _round_up(M, 16)
    best = None
    for t in (1024, 512, 256, 128, 64, 32, 16):
        if t > cap:
            continue
        Mp = _round_up(M, t)
        if Mp - Mp0 <= Mp0 // 8:
            return t, Mp
        if best is None or Mp < best[1]:
            best = (t, Mp)
    return best


# --------------------------------------------------------------------------
# Fused matmul Pallas kernel:  out = relu?((A @ B) * scale + bias + residual)
# --------------------------------------------------------------------------

def matmul_fused(a, b, scale=None, bias=None, residual=None, relu=False,
                 out_dtype=jnp.float32):
    """a:(M,K) ; b:(Kb,Nb) (Nb 128-aligned) ; scale/bias:(1,Nb) ; res:(M,Nb).

    Returns (M, Nb) with the output channel padding carried (no N slice)."""
    M, K = a.shape
    Kb, Nb = b.shape
    assert Kb >= K
    has_affine = scale is not None
    has_res = residual is not None

    Kp = _round_up(Kb, 128)
    Np = _round_up(Nb, 128)
    tk = next(t for t in _TK_CANDIDATES if Kp % t == 0)
    tn = next(t for t in _TN_CANDIDATES if Np % t == 0)
    tm, Mp = _choose_tm(M)

    a = a.astype(jnp.bfloat16)
    if (Mp, Kp) != (M, K):
        a = jnp.pad(a, ((0, Mp - M), (0, Kp - K)))
    if (Kp, Np) != (Kb, Nb):
        b = jnp.pad(b, ((0, Kp - Kb), (0, Np - Nb)))

    inputs = [a, b]
    in_specs = [pl.BlockSpec((tm, tk), lambda i, j, k: (i, k)),
                pl.BlockSpec((tk, tn), lambda i, j, k: (k, j))]
    if has_affine:
        inputs += [scale, bias]
        in_specs += [pl.BlockSpec((1, tn), lambda i, j, k: (0, j)),
                     pl.BlockSpec((1, tn), lambda i, j, k: (0, j))]
    if has_res:
        r = residual
        if r.shape != (Mp, Np):
            r = jnp.pad(r, ((0, Mp - r.shape[0]), (0, Np - r.shape[1])))
        inputs.append(r)
        in_specs.append(pl.BlockSpec((tm, tn), lambda i, j, k: (i, j)))

    def kernel(*refs):
        a_ref, b_ref = refs[0], refs[1]
        o_ref, acc_ref = refs[-2], refs[-1]
        pos = 2
        if has_affine:
            s_ref, c_ref = refs[pos], refs[pos + 1]
            pos += 2
        if has_res:
            r_ref = refs[pos]

        @pl.when(pl.program_id(2) == 0)
        def _():
            acc_ref[...] = jnp.zeros_like(acc_ref)

        acc_ref[...] += jnp.dot(a_ref[...], b_ref[...],
                                preferred_element_type=jnp.float32)

        @pl.when(pl.program_id(2) == pl.num_programs(2) - 1)
        def _():
            y = acc_ref[...]
            if has_affine:
                y = y * s_ref[...] + c_ref[...]
            if has_res:
                y = y + r_ref[...].astype(jnp.float32)
            if relu:
                y = jnp.maximum(y, 0.0)
            o_ref[...] = y.astype(o_ref.dtype)

    grid = (Mp // tm, Np // tn, Kp // tk)
    out = pl.pallas_call(
        kernel,
        out_shape=jax.ShapeDtypeStruct((Mp, Np), out_dtype),
        grid_spec=pltpu.PrefetchScalarGridSpec(
            num_scalar_prefetch=0,
            grid=grid,
            in_specs=in_specs,
            out_specs=pl.BlockSpec((tm, tn), lambda i, j, k: (i, j)),
            scratch_shapes=[pltpu.VMEM((tm, tn), jnp.float32)],
        ),
        compiler_params=pltpu.CompilerParams(
            dimension_semantics=("parallel", "parallel", "arbitrary"),
            vmem_limit_bytes=_vmem_limit_bytes()),
    )(*inputs)
    return out[:M]


# --------------------------------------------------------------------------
# Streamed (tap-accumulating) KxK stride-1 conv.
# The padded activation is kept flattened over (Hp+1)*Wp; each of the k*k
# taps is a *static* contiguous row-slice of that flat buffer, so the K grid
# axis only iterates over Cin tiles and the 9 shifted matmuls accumulate into
# a single f32 scratch.  Output is computed on the W-padded grid (Ho*Wp rows)
# and the valid Wo columns are sliced afterwards.
# --------------------------------------------------------------------------

def _stream_plan(xshape, p, padding, dilation):
    N, H, W, Cp = xshape
    kh = p["kh"]
    Ho = H + 2 * padding - dilation * (kh - 1)
    Wo = W + 2 * padding - dilation * (kh - 1)
    if Ho <= 0 or Wo <= 0:
        return None
    Hp, Wp = H + 2 * padding, W + 2 * padding
    P_in = (Hp + 1) * Wp
    M_out = Ho * Wp
    Cout_p = p["cout_p"]
    KK = kh * kh
    budget = int(_vmem_limit_bytes() * 0.7)
    tn = next(t for t in _TN_CANDIDATES if Cout_p % t == 0)
    for tc in (512, 256, 128):
        if Cp % tc:
            continue
        need = (2 * P_in * tc * 2          # x block, double buffered (bf16)
                + 2 * KK * tc * tn * 2     # weight block, double buffered
                + M_out * tn * 4           # f32 accumulator
                + 2 * M_out * tn * 2)      # output block, double buffered
        if need <= budget:
            return dict(Ho=Ho, Wo=Wo, Hp=Hp, Wp=Wp, P_in=P_in, M_out=M_out,
                        tc=tc, tn=tn)
    return None                            # fall back to im2col


def _stream_kernel(x_ref, w_ref, s_ref, b_ref, o_ref, acc_ref, *, offs, relu):
    @pl.when(pl.program_id(2) == 0)
    def _():
        acc_ref[...] = jnp.zeros_like(acc_ref)

    m = acc_ref.shape[0]
    for t, off in enumerate(offs):                       # static unroll (k*k taps)
        acc_ref[...] += jnp.dot(x_ref[0, off:off + m, :], w_ref[t],
                                preferred_element_type=jnp.float32)

    @pl.when(pl.program_id(2) == pl.num_programs(2) - 1)
    def _():
        y = acc_ref[...] * s_ref[...] + b_ref[...]
        if relu:
            y = jnp.maximum(y, 0.0)
        o_ref[0, :, :] = y.astype(o_ref.dtype)


def _conv_stream(x, p, padding, dilation, relu, out_dtype, plan):
    N, H, W, Cp = x.shape
    kh = p["kh"]
    KK = kh * kh
    Ho, Wo, Hp, Wp = plan["Ho"], plan["Wo"], plan["Hp"], plan["Wp"]
    P_in, M_out, tc, tn = plan["P_in"], plan["M_out"], plan["tc"], plan["tn"]
    Cout_p = p["cout_p"]
    assert (kh - 1) * dilation <= Wp

    # one extra bottom row so every tap's contiguous slice stays in-bounds
    xb = jnp.pad(x.astype(jnp.bfloat16),
                 ((0, 0), (padding, padding + 1), (padding, padding), (0, 0)))
    x_flat = xb.reshape(N, P_in, Cp)
    offs = tuple((dy * Wp + dx) * dilation for dy in range(kh) for dx in range(kh))

    out = pl.pallas_call(
        functools.partial(_stream_kernel, offs=offs, relu=relu),
        out_shape=jax.ShapeDtypeStruct((N, M_out, Cout_p), out_dtype),
        grid_spec=pltpu.PrefetchScalarGridSpec(
            num_scalar_prefetch=0,
            grid=(N, Cout_p // tn, Cp // tc),
            in_specs=[
                pl.BlockSpec((1, P_in, tc), lambda n, j, c: (n, 0, c)),
                pl.BlockSpec((KK, tc, tn), lambda n, j, c: (0, c, j)),
                pl.BlockSpec((1, tn), lambda n, j, c: (0, j)),
                pl.BlockSpec((1, tn), lambda n, j, c: (0, j)),
            ],
            out_specs=pl.BlockSpec((1, M_out, tn), lambda n, j, c: (n, 0, j)),
            scratch_shapes=[pltpu.VMEM((M_out, tn), jnp.float32)],
        ),
        compiler_params=pltpu.CompilerParams(
            dimension_semantics=("parallel", "parallel", "arbitrary"),
            vmem_limit_bytes=_vmem_limit_bytes()),
    )(x_flat, p["w"], p["s"], p["b"])
    return out.reshape(N, Ho, Wp, Cout_p)[:, :, :Wo, :]


# --------------------------------------------------------------------------
# Conv wrappers (1x1 / streamed / im2col-fallback)
# --------------------------------------------------------------------------

def _conv_1x1(x, p, stride, relu, residual, out_dtype):
    if stride > 1:
        x = x[:, ::stride, ::stride, :]
    N, H, W, Cin = x.shape
    assert Cin == p["cin_p"]
    A = x.astype(jnp.bfloat16).reshape(N * H * W, Cin)
    res = None
    if residual is not None:
        res = residual.reshape(N * H * W, p["cout_p"])
    out = matmul_fused(A, p["w"].reshape(Cin, p["cout_p"]), p["s"], p["b"],
                       residual=res, relu=relu, out_dtype=out_dtype)
    return out.reshape(N, H, W, p["cout_p"])


def _conv_im2col(x, p, stride, padding, dilation, relu, residual, out_dtype):
    N, H, W, Cin = x.shape
    kh, kw = p["kh"], p["kw"]
    assert Cin == p["cin_p"]
    Ho = (H + 2 * padding - dilation * (kh - 1) - 1) // stride + 1
    Wo = (W + 2 * padding - dilation * (kw - 1) - 1) // stride + 1
    xb = x.astype(jnp.bfloat16)
    if padding > 0:
        xb = jnp.pad(xb, ((0, 0), (padding, padding), (padding, padding), (0, 0)))
    taps = []
    for dy in range(kh):
        for dx in range(kw):
            ys, xs = dy * dilation, dx * dilation
            taps.append(xb[:, ys: ys + stride * (Ho - 1) + 1: stride,
                           xs: xs + stride * (Wo - 1) + 1: stride, :])
    A = taps[0] if len(taps) == 1 else jnp.concatenate(taps, axis=-1)
    A = A.reshape(N * Ho * Wo, kh * kw * Cin)
    res = None
    if residual is not None:
        res = residual.reshape(N * Ho * Wo, p["cout_p"])
    out = matmul_fused(A, p["w"].reshape(kh * kw * Cin, p["cout_p"]),
                       p["s"], p["b"], residual=res, relu=relu,
                       out_dtype=out_dtype)
    return out.reshape(N, Ho, Wo, p["cout_p"])


def conv2d(x, p, stride=1, padding=0, dilation=1, relu=False, residual=None,
           out_dtype=jnp.bfloat16):
    kh, kw = p["kh"], p["kw"]
    if kh == 1 and kw == 1:
        assert padding == 0
        return _conv_1x1(x, p, stride, relu, residual, out_dtype)
    if (stride == 1 and residual is None and kh == kw
            and x.shape[-1] == p["cin_p"]):
        plan = _stream_plan(x.shape, p, padding, dilation)
        if plan is not None:
            return _conv_stream(x, p, padding, dilation, relu, out_dtype, plan)
    return _conv_im2col(x, p, stride, padding, dilation, relu, residual,
                        out_dtype)


# --------------------------------------------------------------------------
# Max-pool 3x3 / stride 2 / pad 1 — separable max over strided slices
# (XLA fuses the two 3-tap max trees; no 9x stacked HBM tensor).
# --------------------------------------------------------------------------

def maxpool_3x3_s2_p1(x):
    N, H, W, C = x.shape
    Ho = (H + 2 - 3) // 2 + 1
    Wo = (W + 2 - 3) // 2 + 1
    xp = jnp.pad(x, ((0, 0), (1, 1), (1, 1), (0, 0)),
                 constant_values=float("-inf"))
    cols = [xp[:, :, dx: dx + 2 * (Wo - 1) + 1: 2, :] for dx in range(3)]
    mw = jnp.maximum(jnp.maximum(cols[0], cols[1]), cols[2])
    rows = [mw[:, dy: dy + 2 * (Ho - 1) + 1: 2, :, :] for dy in range(3)]
    return jnp.maximum(jnp.maximum(rows[0], rows[1]), rows[2])


# --------------------------------------------------------------------------
# Global average pool (chunked running-sum Pallas kernel)
# --------------------------------------------------------------------------

def _gap_kernel(x_ref, o_ref, acc_ref, *, denom):
    @pl.when(pl.program_id(1) == 0)
    def _():
        acc_ref[...] = jnp.zeros_like(acc_ref)

    acc_ref[...] += jnp.sum(x_ref[...].astype(jnp.float32), axis=1,
                            keepdims=True)

    @pl.when(pl.program_id(1) == pl.num_programs(1) - 1)
    def _():
        o_ref[...] = acc_ref[...] * (1.0 / denom)


def global_avg_pool(x):
    """AdaptiveAvgPool2d(1) on NHWC input -> (N,1,1,C) f32."""
    N, H, W, C = x.shape
    HW = H * W
    Cp = _round_up(C, 128)
    chunk = min(1024, _round_up(HW, 16))     # fits v5e's default scoped VMEM
    HWp = _round_up(HW, chunk)
    xr = x.reshape(N, HW, C)
    if (HWp, Cp) != (HW, C):
        xr = jnp.pad(xr, ((0, 0), (0, HWp - HW), (0, Cp - C)))

    out = pl.pallas_call(
        functools.partial(_gap_kernel, denom=float(HW)),
        out_shape=jax.ShapeDtypeStruct((N, 1, Cp), jnp.float32),
        grid_spec=pltpu.PrefetchScalarGridSpec(
            num_scalar_prefetch=0,
            grid=(N, HWp // chunk),
            in_specs=[pl.BlockSpec((1, chunk, Cp), lambda i, j: (i, j, 0))],
            out_specs=pl.BlockSpec((1, 1, Cp), lambda i, j: (i, 0, 0)),
            scratch_shapes=[pltpu.VMEM((1, 1, Cp), jnp.float32)],
        ),
        compiler_params=pltpu.CompilerParams(
            dimension_semantics=("parallel", "arbitrary"),
            vmem_limit_bytes=_vmem_limit_bytes()),
    )(xr)
    return out[:, :, :C].reshape(N, 1, 1, C)


# --------------------------------------------------------------------------
# Bilinear resize (align_corners=False) — gather + lerp, one pass per axis.
# --------------------------------------------------------------------------

def _interp_indices(in_size, out_size):
    if in_size == 1:
        z = np.zeros((out_size,), np.int32)
        return z, z, np.zeros((out_size,), np.float32)
    scale = in_size / out_size
    src = (np.arange(out_size, dtype=np.float64) + 0.5) * scale - 0.5
    src = np.maximum(src, 0.0)
    i0 = np.minimum(np.floor(src), in_size - 1).astype(np.int32)
    i1 = np.minimum(i0 + 1, in_size - 1).astype(np.int32)
    t = (src - i0).astype(np.float32)
    return i0, i1, t


def bilinear_resize(x, out_h, out_w):
    x = x.astype(jnp.float32)
    N, h, w, C = x.shape
    r0, r1, rt = _interp_indices(h, out_h)
    rt = jnp.asarray(rt)[None, :, None, None]
    y = x[:, r0] * (1.0 - rt) + x[:, r1] * rt
    c0, c1, ct = _interp_indices(w, out_w)
    ct = jnp.asarray(ct)[None, None, :, None]
    return y[:, :, c0] * (1.0 - ct) + y[:, :, c1] * ct


# --------------------------------------------------------------------------
# Parameter construction (shapes follow torchvision deeplabv3_resnet50:
# ResNet-50 backbone at output stride 8, ASPP head).  Weights are packed as
# (k*k, Cin_pad128, Cout_pad128) bf16 at init; folded-BN scale/bias padded
# with zeros so carried padded channels stay exactly 0.
# --------------------------------------------------------------------------

class _KeyGen:
    def __init__(self, seed):
        self._base = jax.random.PRNGKey(seed)
        self._i = 0

    def __call__(self):
        self._i += 1
        return jax.random.fold_in(self._base, self._i)


def _conv_w(kg, cout, cin, kh, kw):
    std = math.sqrt(2.0 / (cin * kh * kw))
    return jax.random.normal(kg(), (cout, cin, kh, kw), jnp.float32) * std


def _bn_fold(kg, c, eps=1e-5):
    gamma = jax.random.uniform(kg(), (c,), jnp.float32, 0.5, 1.5)
    beta = jax.random.normal(kg(), (c,), jnp.float32) * 0.1
    mean = jnp.zeros((c,), jnp.float32)
    var = jnp.ones((c,), jnp.float32)
    scale = gamma / jnp.sqrt(var + eps)
    bias = beta - mean * scale
    return scale, bias


def _pack_conv(w_oihw, scale, bias, pad_cin=True):
    cout, cin, kh, kw = w_oihw.shape
    cin_p = _round_up(cin, 128) if pad_cin else cin
    cout_p = _round_up(cout, 128)
    w = jnp.transpose(w_oihw, (2, 3, 1, 0)).reshape(kh * kw, cin, cout)
    w = jnp.pad(w, ((0, 0), (0, cin_p - cin), (0, cout_p - cout)))
    s = jnp.pad(scale.astype(jnp.float32), (0, cout_p - cout)).reshape(1, cout_p)
    b = jnp.pad(bias.astype(jnp.float32), (0, cout_p - cout)).reshape(1, cout_p)
    return {"w": w.astype(jnp.bfloat16), "kh": kh, "kw": kw,
            "cin": cin, "cin_p": cin_p, "cout": cout, "cout_p": cout_p,
            "s": s, "b": b}


def _make_bottleneck(kg, inplanes, planes, stride, dilation, downsample):
    p = {"stride": stride, "dilation": dilation}
    p["c1"] = _pack_conv(_conv_w(kg, planes, inplanes, 1, 1), *_bn_fold(kg, planes))
    p["c2"] = _pack_conv(_conv_w(kg, planes, planes, 3, 3), *_bn_fold(kg, planes))
    p["c3"] = _pack_conv(_conv_w(kg, planes * 4, planes, 1, 1),
                         *_bn_fold(kg, planes * 4))
    if downsample:
        p["cd"] = _pack_conv(_conv_w(kg, planes * 4, inplanes, 1, 1),
                             *_bn_fold(kg, planes * 4))
    return p


def init_deeplabv3_params(num_classes=21, num_channels=3, seed=0):
    kg = _KeyGen(seed)
    params = {}
    # stem (conv1 replaced when num_channels != 3, same shapes otherwise)
    params["conv1"] = _pack_conv(_conv_w(kg, 64, num_channels, 7, 7),
                                 *_bn_fold(kg, 64), pad_cin=False)

    # ResNet-50 layers, replace_stride_with_dilation=[False, True, True]
    inplanes, dilation = 64, 1
    cfg = [(64, 3, 1, False), (128, 4, 2, False),
           (256, 6, 2, True), (512, 3, 2, True)]
    layers = []
    for planes, blocks, stride, dilate in cfg:
        prev_dilation = dilation
        if dilate:
            dilation *= stride
            stride = 1
        downsample = (stride != 1) or (inplanes != planes * 4)
        blks = [_make_bottleneck(kg, inplanes, planes, stride,
                                 prev_dilation, downsample)]
        inplanes = planes * 4
        for _ in range(blocks - 1):
            blks.append(_make_bottleneck(kg, inplanes, planes, 1, dilation, False))
        layers.append(blks)
    params["layers"] = layers

    # ASPP with atrous rates (12, 24, 36)
    aspp = {}
    aspp["c0"] = _pack_conv(_conv_w(kg, 256, 2048, 1, 1), *_bn_fold(kg, 256))
    for i in (1, 2, 3):
        aspp[f"c{i}"] = _pack_conv(_conv_w(kg, 256, 2048, 3, 3), *_bn_fold(kg, 256))
    aspp["cp"] = _pack_conv(_conv_w(kg, 256, 2048, 1, 1), *_bn_fold(kg, 256))
    aspp["proj"] = _pack_conv(_conv_w(kg, 256, 1280, 1, 1), *_bn_fold(kg, 256))
    params["aspp"] = aspp

    # DeepLabHead tail: 3x3 conv + BN + ReLU, then 1x1 conv (with bias)
    params["head"] = _pack_conv(_conv_w(kg, 256, 256, 3, 3), *_bn_fold(kg, 256))
    cls_bias = jax.random.normal(kg(), (num_classes,), jnp.float32) * 0.05
    params["cls"] = _pack_conv(_conv_w(kg, num_classes, 256, 1, 1),
                               jnp.ones((num_classes,), jnp.float32), cls_bias)
    return params


# --------------------------------------------------------------------------
# Forward pass
# --------------------------------------------------------------------------

def _bottleneck_fwd(x, p):
    out = conv2d(x, p["c1"], relu=True)
    out = conv2d(out, p["c2"], stride=p["stride"], padding=p["dilation"],
                 dilation=p["dilation"], relu=True)
    if "cd" in p:
        identity = conv2d(x, p["cd"], stride=p["stride"], relu=False)
    else:
        identity = x
    # third conv fuses BN-affine + residual add + ReLU in its matmul epilogue
    return conv2d(out, p["c3"], relu=True, residual=identity)


def _aspp_fwd(x, p):
    N, h, w, _ = x.shape
    branches = [conv2d(x, p["c0"], relu=True)]
    for i, rate in enumerate((12, 24, 36), start=1):
        branches.append(conv2d(x, p[f"c{i}"], padding=rate, dilation=rate,
                               relu=True))
    pooled = global_avg_pool(x)
    pooled = conv2d(pooled, p["cp"], relu=True)
    # bilinear upsample from 1x1 back to (h, w) is just a broadcast
    branches.append(jnp.broadcast_to(pooled, (N, h, w, pooled.shape[-1])))
    cat = jnp.concatenate(branches, axis=-1)
    out = conv2d(cat, p["proj"], relu=True)
    # Dropout(0.5) is identity in eval mode.
    return out


def deeplabv3_forward(params, x_nchw):
    """Equivalent of DeepLabV3ResNet50.forward(x) -> model(x)['out'] (NCHW)."""
    x = jnp.transpose(x_nchw, (0, 2, 3, 1)).astype(jnp.float32)  # NCHW -> NHWC
    N, H, W, _ = x.shape

    # backbone stem
    x = conv2d(x, params["conv1"], stride=2, padding=3, relu=True)
    x = maxpool_3x3_s2_p1(x)

    # residual stages (output stride 8)
    for layer in params["layers"]:
        for blk in layer:
            x = _bottleneck_fwd(x, blk)

    # classifier = DeepLabHead(2048, num_classes)
    x = _aspp_fwd(x, params["aspp"])
    x = conv2d(x, params["head"], padding=1, relu=True)
    x = conv2d(x, params["cls"], relu=False, out_dtype=jnp.float32)
    x = x[..., :params["cls"]["cout"]]          # drop carried channel padding

    # final bilinear upsample to the input spatial size
    x = bilinear_resize(x, H, W)
    return jnp.transpose(x, (0, 3, 1, 2))       # NHWC -> NCHW


if __name__ == "__main__":
    num_classes = 21
    num_channels = 4        # exercises the conv1 replacement branch of __init__
    batch, height, width = 2, 16, 16

    params = init_deeplabv3_params(num_classes=num_classes,
                                   num_channels=num_channels, seed=0)
    x = jax.random.normal(jax.random.PRNGKey(0),
                          (batch, num_channels, height, width), jnp.float32)

    out = deeplabv3_forward(params, x)
    out = jax.block_until_ready(out)

    assert out.shape == (batch, num_classes, height, width), out.shape
    assert bool(jnp.all(jnp.isfinite(out)))
    print("KERNEL_OK")
</pallas_src>

<mosaic_0001>
module attributes {stable_mosaic.version = 11 : i64} {
  func.func @kernel(%arg0: i32, %arg1: i32, %arg2: i32, %arg3: memref<128x256xbf16, #tpu.memory_space<vmem>>, %arg4: memref<256x128xbf16, #tpu.memory_space<vmem>>, %arg5: memref<1x128xf32, #tpu.memory_space<vmem>>, %arg6: memref<1x128xf32, #tpu.memory_space<vmem>>, %arg7: memref<128x128xbf16, #tpu.memory_space<vmem>>, %arg8: memref<128x128xf32, #tpu.memory_space<vmem>>) attributes {dimension_semantics = [#tpu.dimension_semantics<parallel>, #tpu.dimension_semantics<parallel>, #tpu.dimension_semantics<arbitrary>], iteration_bounds = array<i64: 1, 1, 1>, scalar_prefetch = 0 : i64, scratch_operands = 1 : i64, tpu.core_type = #tpu.core_type<tc>, window_params = [{transform_indices = @transform_0, window_bounds = array<i64: 128, 256>}, {transform_indices = @transform_1, window_bounds = array<i64: 256, 128>}, {transform_indices = @transform_2, window_bounds = array<i64: 1, 128>}, {transform_indices = @transform_3, window_bounds = array<i64: 1, 128>}, {transform_indices = @transform_4, window_bounds = array<i64: 128, 128>}]} {
    %c0_i32 = arith.constant 0 : i32
    %0 = arith.cmpi eq, %arg2, %c0_i32 : i32
    %1 = arith.extui %0 : i1 to i32
    %c0_i32_0 = arith.constant 0 : i32
    %2 = arith.cmpi ne, %1, %c0_i32_0 : i32
    scf.if %2 {
      %cst_10 = arith.constant 0.000000e+00 : f32
      %12 = vector.broadcast %cst_10 : f32 to vector<128x128xf32>
      %c0_11 = arith.constant 0 : index
      %c0_12 = arith.constant 0 : index
      %13 = vector.load %arg8[%c0_11, %c0_12] : memref<128x128xf32, #tpu.memory_space<vmem>>, vector<128x128xf32>
      tpu.vector_store %arg8[%c0_11, %c0_12], %12 {strides = array<i32>} : memref<128x128xf32, #tpu.memory_space<vmem>>, vector<128x128xf32>,
    } else {
    }
    %c0 = arith.constant 0 : index
    %c0_1 = arith.constant 0 : index
    %3 = vector.load %arg8[%c0, %c0_1] : memref<128x128xf32, #tpu.memory_space<vmem>>, vector<128x128xf32>
    %c0_2 = arith.constant 0 : index
    %c0_3 = arith.constant 0 : index
    %4 = vector.load %arg3[%c0_2, %c0_3] : memref<128x256xbf16, #tpu.memory_space<vmem>>, vector<128x256xbf16>
    %c0_4 = arith.constant 0 : index
    %c0_5 = arith.constant 0 : index
    %5 = vector.load %arg4[%c0_4, %c0_5] : memref<256x128xbf16, #tpu.memory_space<vmem>>, vector<256x128xbf16>
    %cst = arith.constant dense<0.000000e+00> : vector<128x128xf32>
    %6 = tpu.matmul %4, %5, %cst {dimension_numbers = #tpu.dot_dimension_numbers<[1], [0], [0], [1], [0, 0, 1, 1], [], []>} : vector<128x256xbf16>, vector<256x128xbf16>, vector<128x128xf32> -> vector<128x128xf32>
    %7 = arith.addf %3, %6 : vector<128x128xf32>
    %c0_6 = arith.constant 0 : index
    %c0_7 = arith.constant 0 : index
    %8 = vector.load %arg8[%c0_6, %c0_7] : memref<128x128xf32, #tpu.memory_space<vmem>>, vector<128x128xf32>
    tpu.vector_store %arg8[%c0_6, %c0_7], %7 {strides = array<i32>} : memref<128x128xf32, #tpu.memory_space<vmem>>, vector<128x128xf32>,
    %c0_i32_8 = arith.constant 0 : i32
    %9 = arith.cmpi eq, %arg2, %c0_i32_8 : i32
    %10 = arith.extui %9 : i1 to i32
    %c0_i32_9 = arith.constant 0 : i32
    %11 = arith.cmpi ne, %10, %c0_i32_9 : i32
    scf.if %11 {
      %c0_10 = arith.constant 0 : index
      %c0_11 = arith.constant 0 : index
      %12 = vector.load %arg8[%c0_10, %c0_11] : memref<128x128xf32, #tpu.memory_space<vmem>>, vector<128x128xf32>
      %c0_12 = arith.constant 0 : index
      %c0_13 = arith.constant 0 : index
      %13 = vector.load %arg5[%c0_12, %c0_13] : memref<1x128xf32, #tpu.memory_space<vmem>>, vector<1x128xf32>
      %14 = vector.broadcast %13 : vector<1x128xf32> to vector<128x128xf32>
      %15 = arith.mulf %12, %14 : vector<128x128xf32>
      %c0_14 = arith.constant 0 : index
      %c0_15 = arith.constant 0 : index
      %16 = vector.load %arg6[%c0_14, %c0_15] : memref<1x128xf32, #tpu.memory_space<vmem>>, vector<1x128xf32>
      %17 = vector.broadcast %16 : vector<1x128xf32> to vector<128x128xf32>
      %18 = arith.addf %15, %17 : vector<128x128xf32>
      %cst_16 = arith.constant 0.000000e+00 : f32
      %19 = vector.broadcast %cst_16 : f32 to vector<128x128xf32>
      %20 = arith.maximumf %18, %19 : vector<128x128xf32>
      %21 = arith.truncf %20 : vector<128x128xf32> to vector<128x128xbf16>
      %c0_17 = arith.constant 0 : index
      %c0_18 = arith.constant 0 : index
      %22 = vector.load %arg7[%c0_17, %c0_18] : memref<128x128xbf16, #tpu.memory_space<vmem>>, vector<128x128xbf16>
      tpu.vector_store %arg7[%c0_17, %c0_18], %21 {strides = array<i32>} : memref<128x128xbf16, #tpu.memory_space<vmem>>, vector<128x128xbf16>,
    } else {
    }
    return
  }
  func.func @transform_0(%arg0: i32, %arg1: i32, %arg2: i32) -> (i32, i32) {
    %c0_i32 = arith.constant 0 : i32
    return %arg0, %arg2 : i32, i32
  }
  func.func @transform_1(%arg0: i32, %arg1: i32, %arg2: i32) -> (i32, i32) {
    %c0_i32 = arith.constant 0 : i32
    return %arg2, %arg1 : i32, i32
  }
  func.func @transform_2(%arg0: i32, %arg1: i32, %arg2: i32) -> (i32, i32) {
    %c0_i32 = arith.constant 0 : i32
    %c0_i32_0 = arith.constant 0 : i32
    return %c0_i32, %arg1 : i32, i32
  }
  func.func @transform_3(%arg0: i32, %arg1: i32, %arg2: i32) -> (i32, i32) {
    %c0_i32 = arith.constant 0 : i32
    %c0_i32_0 = arith.constant 0 : i32
    return %c0_i32, %arg1 : i32, i32
  }
  func.func @transform_4(%arg0: i32, %arg1: i32, %arg2: i32) -> (i32, i32) {
    %c0_i32 = arith.constant 0 : i32
    return %arg0, %arg1 : i32, i32
  }
}

</mosaic_0001>

<bundles_post_ra>
// kernel: tpu_custom_call.1
= control target key start
LH: loop header
LB: loop body
LE: loop exit
PB: predicated region body
PF: predicated region fallthrough
CT: control target
= control target key end

     0   :  { %9 = vsyncpa [#allocation4], 0  ;;  %s966_s0 = inlined_call_operand.hbm [shape: bf16[128,256], index: 0, kind: input, shape index: {}]   ;;  %s967_s1 = inlined_call_operand.hbm [shape: bf16[256,128], index: 1, kind: input, shape index: {}]   ;;  %s968_s2 = inlined_call_operand.vmem [shape: f32[1,128], index: 2, kind: input, shape index: {}]   ;;  %s969_s3 = inlined_call_operand.vmem [shape: f32[1,128], index: 3, kind: input, shape index: {}]   ;;  %s970_s4 = inlined_call_operand.hbm [shape: bf16[128,128], index: 4, kind: output, shape index: {}]  }
   0x1   :  { %10 = vsyncpa [#allocation7], 0 }
   0x2   :  { %11 = vsyncpa [#allocation5], 0  ;;  %s16_s17 = sshll.u32 %s966_s0, 4  ;;  %s877_s18 = smov [#allocation3]   ;;  %s17_s17 = int_to_ptr.hbm [resolvable:$true] %s16_s17 }
   0x3   :  { %s18_s19 = sshll.u32 %s877_s18, 4  ;;  %s29_s22 = sshll.u32 %s967_s1, 4  ;;  %s19_s19 = int_to_ptr.vmem [resolvable:$true] %s18_s19  ;;  %s30_s22 = int_to_ptr.hbm [resolvable:$true] %s29_s22 }
   0x4   :  { %s878_s23 = smov 128   ;;  %s879_s24 = smov 8  }
   0x5   :  { %24 = dma.hbm_to_vmem [thread:$0]  %s17_s17, 2048, %s19_s19, [#allocation4], %s878_s23, %s878_s23, %s879_s24  }
   0x6   :  { %s880_s25 = smov [#allocation6]   ;;  %s881_s27 = smov 64  }
   0x7   :  { %s31_s26 = sshll.u32 %s880_s25, 4  ;;  %s882_s28 = smov 4   ;;  %s32_s26 = int_to_ptr.vmem [resolvable:$true] %s31_s26 }
   0x8   :  { %37 = dma.hbm_to_vmem [thread:$0]  %s30_s22, 2048, %s32_s26, [#allocation7], %s881_s27, %s881_s27, %s882_s28  }
   0x9   :  { %871 = dma.done.wait [#allocation4], 2048  }
   0xa   :  { %872 = vsyncadd [#allocation4], 4294965248 }
   0xb   :  { %873 = dma.done.wait [#allocation7], 2048  }
   0xc   :  { %874 = vsyncadd [#allocation7], 4294965248  ;;  %v718_v0 = vld [vmem:[#allocation6 + $0x38] sm:$0xff]  ;;  %v717_v2 = vld [vmem:[#allocation6 + $0x30] sm:$0xff]  ;;  %s553_s7 = sshll.u32 %s970_s4, 4  ;;  %s554_s7 = int_to_ptr.hbm [resolvable:$true] %s553_s7 }
   0xd   :  { %v726_v1 = vld [vmem:[#allocation6 + $0x78] sm:$0xff]  ;;  %310 = vmatpush.bf16.msra.mxu0 %v718_v0  ;;  %774 = vmatpush.bf16.msra.mxu2 %v718_v0  ;;  %v725_v3 = vld [vmem:[#allocation6 + $0x70] sm:$0xff]  ;;  %v716_v4 = vld [vmem:[#allocation6 + $0x28] sm:$0xff] }
   0xe   :  { %359 = vmatpush.bf16.msra.mxu1 %v726_v1  ;;  %782 = vmatpush.bf16.msra.mxu3 %v726_v1  ;;  %v724_v5 = vld [vmem:[#allocation6 + $0x68] sm:$0xff]  ;;  %v715_v6 = vld [vmem:[#allocation6 + $0x20] sm:$0xff]  ;;  %v714_v8 = vld [vmem:[#allocation6 + $0x18] sm:$0xff] }
   0xf   :  { %v723_v7 = vld [vmem:[#allocation6 + $0x60] sm:$0xff]  ;;  %v722_v9 = vld [vmem:[#allocation6 + $0x58] sm:$0xff]  ;;  %v713_v10 = vld [vmem:[#allocation6 + $0x10] sm:$0xff] }
  0x10   :  { %v721_v11 = vld [vmem:[#allocation6 + $0x50] sm:$0xff]  ;;  %v712_v12 = vld [vmem:[#allocation6 + $0x8] sm:$0xff]  ;;  %v711_v14 = vld [vmem:[#allocation6] sm:$0xff] }
  0x11   :  { %311 = vmatpush.bf16.msra.mxu0 %v717_v2  ;;  %775 = vmatpush.bf16.msra.mxu2 %v717_v2  ;;  %v720_v13 = vld [vmem:[#allocation6 + $0x48] sm:$0xff]  ;;  %v719_v15 = vld [vmem:[#allocation6 + $0x40] sm:$0xff]  ;;  %v577_v28 = vld [vmem:[#allocation3 + $0x10] sm:$0xf] }
  0x12   :  { %360 = vmatpush.bf16.msra.mxu1 %v725_v3  ;;  %783 = vmatpush.bf16.msra.mxu3 %v725_v3  ;;  %v569_v16 = vld [vmem:[#allocation3] sm:$0xf]  ;;  %v696_v17 = vld [vmem:[#allocation3 + $0x4] sm:$0xf0]  ;;  %v695_v20 = vld [vmem:[#allocation3 + $0x4] sm:$0xf] }
  0x13   :  { %v601_v18 = vld [vmem:[#allocation3 + $0x40] sm:$0xf]  ;;  %v704_v19 = vld [vmem:[#allocation3 + $0x44] sm:$0xf0]  ;;  %v571_v21 = vld [vmem:[#allocation3 + $0x8] sm:$0xf0]  ;;  %v570_v24 = vor.u32 %v696_v17, %v569_v16 }
  0x14   :  { %v703_v22 = vld [vmem:[#allocation3 + $0x44] sm:$0xf]  ;;  %v603_v23 = vld [vmem:[#allocation3 + $0x48] sm:$0xf0]  ;;  %v602_v25 = vor.u32 %v704_v19, %v601_v18  ;;  %v574_v26 = vor.u32 %v695_v20, %v571_v21  ;;  %v698_v29 = vld [vmem:[#allocation3 + $0x14] sm:$0xf0] }
  0x15   :  { %312 = vmatpush.bf16.msra.mxu0 %v716_v4  ;;  %776 = vmatpush.bf16.msra.mxu2 %v716_v4  ;;  %v606_v27 = vor.u32 %v703_v22, %v603_v23  ;;  %v609_v30 = vld [vmem:[#allocation3 + $0x50] sm:$0xf]  ;;  %v706_v31 = vld [vmem:[#allocation3 + $0x54] sm:$0xf0]  ;;  %v697_v32 = vld [vmem:[#allocation3 + $0x14] sm:$0xf]  ;;  %v578_v36 = vor.u32 %v698_v29, %v577_v28 }
  0x16   :  { %361 = vmatpush.bf16.msra.mxu1 %v724_v5  ;;  %784 = vmatpush.bf16.msra.mxu3 %v724_v5  ;;  %v579_v33 = vld [vmem:[#allocation3 + $0x18] sm:$0xf0]  ;;  %v705_v34 = vld [vmem:[#allocation3 + $0x54] sm:$0xf]  ;;  %v610_v37 = vor.u32 %v706_v31, %v609_v30  ;;  %v585_v40 = vld [vmem:[#allocation3 + $0x20] sm:$0xf] }
  0x17   :  { %v611_v35 = vld [vmem:[#allocation3 + $0x58] sm:$0xf0]  ;;  %v582_v38 = vor.u32 %v697_v32, %v579_v33  ;;  %v700_v41 = vld [vmem:[#allocation3 + $0x24] sm:$0xf0]  ;;  %v617_v42 = vld [vmem:[#allocation3 + $0x60] sm:$0xf] }
  0x18   :  { %v614_v39 = vor.u32 %v705_v34, %v611_v35  ;;  %v708_v43 = vld [vmem:[#allocation3 + $0x64] sm:$0xf0]  ;;  %v699_v44 = vld [vmem:[#allocation3 + $0x24] sm:$0xf]  ;;  %v587_v45 = vld [vmem:[#allocation3 + $0x28] sm:$0xf0]  ;;  %v586_v48 = vor.u32 %v700_v41, %v585_v40 }
  0x19   :  { %313 = vmatpush.bf16.msra.mxu0 %v715_v6  ;;  %777 = vmatpush.bf16.msra.mxu2 %v715_v6  ;;  %v707_v46 = vld [vmem:[#allocation3 + $0x64] sm:$0xf]  ;;  %v619_v47 = vld [vmem:[#allocation3 + $0x68] sm:$0xf0]  ;;  %v618_v49 = vor.u32 %v708_v43, %v617_v42  ;;  %v590_v50 = vor.u32 %v699_v44, %v587_v45  ;;  %v593_v52 = vld [vmem:[#allocation3 + $0x30] sm:$0xf] }
  0x1a   :  { %362 = vmatpush.bf16.msra.mxu1 %v723_v7  ;;  %785 = vmatpush.bf16.msra.mxu3 %v723_v7  ;;  %v622_v51 = vor.u32 %v707_v46, %v619_v47  ;;  %v702_v53 = vld [vmem:[#allocation3 + $0x34] sm:$0xf0]  ;;  %v625_v54 = vld [vmem:[#allocation3 + $0x70] sm:$0xf]  ;;  %v701_v56 = vld [vmem:[#allocation3 + $0x34] sm:$0xf] }
  0x1b   :  { %v710_v55 = vld [vmem:[#allocation3 + $0x74] sm:$0xf0]  ;;  %v595_v57 = vld [vmem:[#allocation3 + $0x38] sm:$0xf0]  ;;  %v709_v58 = vld [vmem:[#allocation3 + $0x74] sm:$0xf]  ;;  %v594_v60 = vor.u32 %v702_v53, %v593_v52 }
  0x1c   :  { %v627_v59 = vld [vmem:[#allocation3 + $0x78] sm:$0xf0]  ;;  %v626_v61 = vor.u32 %v710_v55, %v625_v54  ;;  %v598_v62 = vor.u32 %v701_v56, %v595_v57  ;;  %v921_v3 = vld [vmem:[%s968_s2] ss:$0 sm:$0xff]  ;;  %s883_s2 = smov [#allocation8]  }
  0x1d   :  { %314 = vmatpush.bf16.msra.mxu0 %v714_v8  ;;  %778 = vmatpush.bf16.msra.mxu2 %v714_v8  ;;  %v630_v63 = vor.u32 %v709_v58, %v627_v59  ;;  %v927_v7 = vld [vmem:[%s969_s3] ss:$0 sm:$0xff]  ;;  %s551_s3 = sshll.u32 %s883_s2, 4  ;;  %s552_s3 = int_to_ptr.vmem [resolvable:$true] %s551_s3 }
  0x1e   :  { %363 = vmatpush.bf16.msra.mxu1 %v722_v9  ;;  %786 = vmatpush.bf16.msra.mxu3 %v722_v9 }
  0x21   :  { %315 = vmatpush.bf16.msra.mxu0 %v713_v10  ;;  %779 = vmatpush.bf16.msra.mxu2 %v713_v10 }
  0x22   :  { %364 = vmatpush.bf16.msra.mxu1 %v721_v11  ;;  %787 = vmatpush.bf16.msra.mxu3 %v721_v11 }
  0x25   :  { %316 = vmatpush.bf16.msra.mxu0 %v712_v12  ;;  %780 = vmatpush.bf16.msra.mxu2 %v712_v12 }
  0x26   :  { %365 = vmatpush.bf16.msra.mxu1 %v720_v13  ;;  %788 = vmatpush.bf16.msra.mxu3 %v720_v13 }
  0x29   :  { %317 = vmatpush.bf16.msra.mxu0 %v711_v14  ;;  %781 = vmatpush.bf16.msra.mxu2 %v711_v14 }
  0x2a   :  { %366 = vmatpush.bf16.msra.mxu1 %v719_v15  ;;  %789 = vmatpush.bf16.msra.mxu3 %v719_v15 }
  0x2c   :  { %318 = vmatmul.bf16.vlgmr.msra.gmra.mxu0 %v570_v24  ;;  %338 = vmatmul.bf16.vlgmr.msra.gmra.mxu2 %v602_v25 }
  0x2d   :  { %367 = vmatmul.bf16.vlgmr.msra.gmra.mxu1 %v574_v26  ;;  %387 = vmatmul.bf16.vlgmr.msra.gmra.mxu3 %v606_v27 }
  0x3c   :  { %323 = vmatmul.bf16.gmra.mxu0 %v578_v36  ;;  %343 = vmatmul.bf16.gmra.mxu2 %v610_v37 }
  0x3d   :  { %372 = vmatmul.bf16.gmra.mxu1 %v582_v38  ;;  %392 = vmatmul.bf16.gmra.mxu3 %v614_v39 }
  0x4c   :  { %328 = vmatmul.bf16.gmra.mxu0 %v586_v48  ;;  %348 = vmatmul.bf16.gmra.mxu2 %v618_v49 }
  0x4d   :  { %377 = vmatmul.bf16.gmra.mxu1 %v590_v50  ;;  %397 = vmatmul.bf16.gmra.mxu3 %v622_v51 }
  0x5c   :  { %333 = vmatmul.bf16.gmra.mxu0 %v594_v60  ;;  %353 = vmatmul.bf16.gmra.mxu2 %v626_v61 }
  0x5d   :  { %382 = vmatmul.bf16.gmra.mxu1 %v598_v62  ;;  %402 = vmatmul.bf16.gmra.mxu3 %v630_v63 }
  0xa9   :  { %v319_v0 = vpop.f32.mrf.mxu0 }
  0xaa   :  { %v368_v1 = vpop.f32.mrf.mxu1 }
  0xab   :  { %v369_v2 = vadd.f32 %v368_v1, %v319_v0 }
  0xad   :  { %v463_v6 = vmul.f32 %v921_v3, %v369_v2 }
  0xaf   :  { %v339_v4 = vpop.f32.mrf.mxu2  ;;  %v483_v12 = vadd.f32 %v927_v7, %v463_v6 }
  0xb0   :  { %v388_v5 = vpop.f32.mrf.mxu3 }
  0xb1   :  { %v321_v8 = vpop.f32.mrf.mxu0  ;;  %v389_v10 = vadd.f32 %v388_v5, %v339_v4  ;;  %v499_v18 = vmax.f32 %v483_v12, 0.0 }
  0xb2   :  { %v370_v9 = vpop.f32.mrf.mxu1 }
  0xb3   :  { %v371_v11 = vadd.f32 %v370_v9, %v321_v8  ;;  %v471_v14 = vmul.f32 %v921_v3, %v389_v10 }
  0xb5   :  { %v464_v13 = vmul.f32 %v921_v3, %v371_v11  ;;  %v491_v23 = vadd.f32 %v927_v7, %v471_v14 }
  0xb7   :  { %v484_v15 = vadd.f32 %v927_v7, %v464_v13  ;;  %v341_v16 = vpop.f32.mrf.mxu2  ;;  %v507_v28 = vmax.f32 %v491_v23, 0.0 }
  0xb8   :  { %v390_v17 = vpop.f32.mrf.mxu3 }
  0xb9   :  { %v500_v19 = vmax.f32 %v484_v15, 0.0  ;;  %v391_v20 = vadd.f32 %v390_v17, %v341_v16  ;;  %v324_v21 = vpop.f32.mrf.mxu0 }
  0xba   :  { %v373_v22 = vpop.f32.mrf.mxu1 }
  0xbb   :  { %v730_v24 = vpack.c.bf16 %v500_v19, %v499_v18  ;;  %v472_v25 = vmul.f32 %v921_v3, %v391_v20  ;;  %v374_v27 = vadd.f32 %v373_v22, %v324_v21 }
  0xbd   :  { %731 = vst [vmem:[#allocation8] sm:$0xff] %v730_v24   ;;  %v492_v26 = vadd.f32 %v927_v7, %v472_v25  ;;  %v465_v33 = vmul.f32 %v921_v3, %v374_v27 }
  0xbf   :  { %v508_v29 = vmax.f32 %v492_v26, 0.0  ;;  %v344_v30 = vpop.f32.mrf.mxu2  ;;  %v485_v38 = vadd.f32 %v927_v7, %v465_v33 }
  0xc0   :  { %v393_v31 = vpop.f32.mrf.mxu3 }
  0xc1   :  { %v750_v32 = vpack.c.bf16 %v508_v29, %v507_v28  ;;  %v326_v34 = vpop.f32.mrf.mxu0  ;;  %v394_v36 = vadd.f32 %v393_v31, %v344_v30  ;;  %v501_v44 = vmax.f32 %v485_v38, 0.0 }
  0xc2   :  { %v375_v35 = vpop.f32.mrf.mxu1 }
  0xc3   :  { %770 = vst [vmem:[#allocation8 + $0x20] sm:$0xff] %v750_v32   ;;  %v376_v37 = vadd.f32 %v375_v35, %v326_v34  ;;  %v473_v40 = vmul.f32 %v921_v3, %v394_v36 }
  0xc5   :  { %v466_v39 = vmul.f32 %v921_v3, %v376_v37  ;;  %v493_v49 = vadd.f32 %v927_v7, %v473_v40 }
  0xc7   :  { %v486_v41 = vadd.f32 %v927_v7, %v466_v39  ;;  %v346_v42 = vpop.f32.mrf.mxu2  ;;  %v509_v54 = vmax.f32 %v493_v49, 0.0 }
  0xc8   :  { %v395_v43 = vpop.f32.mrf.mxu3 }
  0xc9   :  { %v502_v45 = vmax.f32 %v486_v41, 0.0  ;;  %v396_v46 = vadd.f32 %v395_v43, %v346_v42  ;;  %v329_v47 = vpop.f32.mrf.mxu0 }
  0xca   :  { %v378_v48 = vpop.f32.mrf.mxu1 }
  0xcb   :  { %v735_v50 = vpack.c.bf16 %v502_v45, %v501_v44  ;;  %v474_v51 = vmul.f32 %v921_v3, %v396_v46  ;;  %v379_v53 = vadd.f32 %v378_v48, %v329_v47 }
  0xcd   :  { %767 = vst [vmem:[#allocation8 + $0x8] sm:$0xff] %v735_v50   ;;  %v494_v52 = vadd.f32 %v927_v7, %v474_v51  ;;  %v467_v59 = vmul.f32 %v921_v3, %v379_v53 }
  0xcf   :  { %v510_v55 = vmax.f32 %v494_v52, 0.0  ;;  %v349_v56 = vpop.f32.mrf.mxu2  ;;  %v487_v0 = vadd.f32 %v927_v7, %v467_v59 }
  0xd0   :  { %v398_v57 = vpop.f32.mrf.mxu3 }
  0xd1   :  { %v755_v58 = vpack.c.bf16 %v510_v55, %v509_v54  ;;  %v331_v60 = vpop.f32.mrf.mxu0  ;;  %v399_v62 = vadd.f32 %v398_v57, %v349_v56  ;;  %v503_v8 = vmax.f32 %v487_v0, 0.0 }
  0xd2   :  { %v380_v61 = vpop.f32.mrf.mxu1 }
  0xd3   :  { %771 = vst [vmem:[#allocation8 + $0x28] sm:$0xff] %v755_v58   ;;  %v381_v63 = vadd.f32 %v380_v61, %v331_v60  ;;  %v475_v2 = vmul.f32 %v921_v3, %v399_v62 }
  0xd5   :  { %v468_v1 = vmul.f32 %v921_v3, %v381_v63  ;;  %v495_v13 = vadd.f32 %v927_v7, %v475_v2 }
  0xd7   :  { %v488_v4 = vadd.f32 %v927_v7, %v468_v1  ;;  %v351_v5 = vpop.f32.mrf.mxu2  ;;  %v511_v18 = vmax.f32 %v495_v13, 0.0 }
  0xd8   :  { %v400_v6 = vpop.f32.mrf.mxu3 }
  0xd9   :  { %v504_v9 = vmax.f32 %v488_v4, 0.0  ;;  %v401_v10 = vadd.f32 %v400_v6, %v351_v5  ;;  %v334_v11 = vpop.f32.mrf.mxu0 }
  0xda   :  { %v383_v12 = vpop.f32.mrf.mxu1 }
  0xdb   :  { %v740_v14 = vpack.c.bf16 %v504_v9, %v503_v8  ;;  %v476_v15 = vmul.f32 %v921_v3, %v401_v10  ;;  %v384_v17 = vadd.f32 %v383_v12, %v334_v11 }
  0xdd   :  { %768 = vst [vmem:[#allocation8 + $0x10] sm:$0xff] %v740_v14   ;;  %v496_v16 = vadd.f32 %v927_v7, %v476_v15  ;;  %v469_v23 = vmul.f32 %v921_v3, %v384_v17 }
  0xdf   :  { %v512_v19 = vmax.f32 %v496_v16, 0.0  ;;  %v354_v20 = vpop.f32.mrf.mxu2  ;;  %v489_v28 = vadd.f32 %v927_v7, %v469_v23 }
  0xe0   :  { %v403_v21 = vpop.f32.mrf.mxu3 }
  0xe1   :  { %v760_v22 = vpack.c.bf16 %v512_v19, %v511_v18  ;;  %v336_v24 = vpop.f32.mrf.mxu0  ;;  %v404_v26 = vadd.f32 %v403_v21, %v354_v20  ;;  %v505_v34 = vmax.f32 %v489_v28, 0.0 }
  0xe2   :  { %v385_v25 = vpop.f32.mrf.mxu1 }
  0xe3   :  { %772 = vst [vmem:[#allocation8 + $0x30] sm:$0xff] %v760_v22   ;;  %v386_v27 = vadd.f32 %v385_v25, %v336_v24  ;;  %v477_v30 = vmul.f32 %v921_v3, %v404_v26 }
  0xe5   :  { %v470_v29 = vmul.f32 %v921_v3, %v386_v27  ;;  %v497_v37 = vadd.f32 %v927_v7, %v477_v30 }
  0xe7   :  { %v490_v31 = vadd.f32 %v927_v7, %v470_v29  ;;  %v356_v32 = vpop.f32.mrf.mxu2  ;;  %v513_v41 = vmax.f32 %v497_v37, 0.0 }
  0xe8   :  { %v405_v33 = vpop.f32.mrf.mxu3 }
  0xe9   :  { %v506_v35 = vmax.f32 %v490_v31, 0.0  ;;  %v406_v36 = vadd.f32 %v405_v33, %v356_v32 }
  0xeb   :  { %v745_v38 = vpack.c.bf16 %v506_v35, %v505_v34  ;;  %v478_v39 = vmul.f32 %v921_v3, %v406_v36 }
  0xed   :  { %769 = vst [vmem:[#allocation8 + $0x18] sm:$0xff] %v745_v38   ;;  %v498_v40 = vadd.f32 %v927_v7, %v478_v39 }
  0xef   :  { %v514_v42 = vmax.f32 %v498_v40, 0.0 }
  0xf1   :  { %v765_v43 = vpack.c.bf16 %v514_v42, %v513_v41 }
  0xf3   :  { %773 = vst [vmem:[#allocation8 + $0x38] sm:$0xff] %v765_v43  }
  0xf4   :  { %559 = dma.vmem_to_hbm [thread:$0]  %s552_s3, 1024, %s554_s7, [#allocation5], %s881_s27, %s881_s27, %s882_s28  }
  0xf5   :  { %875 = dma.done.wait [#allocation5], 1024  }
  0xf6   :  { %876 = vsyncadd [#allocation5], 4294966272 }
  0xf7   :  { %564 = vsyncpa [#allocation4], 1 }
  0xf8   :  { %565 = vsyncpa [#allocation7], 1 }
  0xf9   :  { %566 = vsyncpa [#allocation5], 1 }

</bundles_post_ra>
